<compile_context>
chip_gen: v5e
topology: v5e:2x2
jax: 0.10.0
libtpu: 0.0.40
codegen_flags: <defaults>
</compile_context>

<pallas_src>
import functools

import jax
import jax.numpy as jnp
from jax.experimental import pallas as pl
from jax.experimental.pallas import tpu as pltpu


def _pad_to(n, m=128):
    return ((n + m - 1) // m) * m


def _pad2(a, rows, cols, dtype):
    """Zero-pad a 2-D array to (rows, cols) and cast to dtype."""
    out = jnp.zeros((rows, cols), dtype)
    return out.at[: a.shape[0], : a.shape[1]].set(a.astype(dtype))


def _vae_kernel(
    zp,                       # static: padded z width (bound via functools.partial)
    x_ref, eps_ref,           # [TB, Dp] bf16, [TB, Zp] f32
    w1_ref, b1_ref,           # fc1:        Dp  -> Hp
    w2_ref, b2_ref,           # fc2:        Hp  -> H2p
    we1_ref, be1_ref,         # fc_extra1:  H2p -> Hp
    wmv_ref, bmv_ref,         # fused fc3|fc4: Hp -> 2*Zp  ([mu | log_var])
    w5_ref, b5_ref,           # fc5:        Zp  -> Hp
    we2_ref, be2_ref,         # fc_extra2:  Hp  -> H2p
    w6_ref, b6_ref,           # fc6:        H2p -> Hp
    w7_ref, b7_ref,           # fc7:        Hp  -> Dp
    recon_ref, muvar_ref,
):
    def linear(h_bf16, w_ref, b_ref):
        # bf16 x bf16 matmul on the MXU with f32 accumulation, f32 bias add.
        return jnp.dot(h_bf16, w_ref[...], preferred_element_type=jnp.float32) + b_ref[...]

    def relu_bf16(y_f32):
        # ReLU in f32 on the VPU; pack to bf16 only as the next matmul's input.
        return jnp.maximum(y_f32, 0.0).astype(jnp.bfloat16)

    # ----- encode -----
    x = x_ref[...]                                   # bf16
    h = relu_bf16(linear(x, w1_ref, b1_ref))
    h = relu_bf16(linear(h, w2_ref, b2_ref))
    h = relu_bf16(linear(h, we1_ref, be1_ref))
    muvar = linear(h, wmv_ref, bmv_ref)              # f32 [TB, 2*Zp] = [mu | log_var]
    mu = muvar[:, :zp]
    log_var = muvar[:, zp:]

    # ----- reparameterize (f32): z = mu + eps * exp(0.5 * log_var) -----
    # Padding invariant: padded bias/weight columns are 0 => mu_pad = log_var_pad = 0,
    # std_pad = exp(0) = 1, and eps is ZERO-padded => z_pad = 0.  Keep eps zero-padded.
    std = jnp.exp(0.5 * log_var)
    z = mu + eps_ref[...] * std

    # ----- decode (no ReLU on z, matching the reference) -----
    h = z.astype(jnp.bfloat16)
    h = relu_bf16(linear(h, w5_ref, b5_ref))
    h = relu_bf16(linear(h, we2_ref, be2_ref))
    h = relu_bf16(linear(h, w6_ref, b6_ref))
    recon = linear(h, w7_ref, b7_ref)                # f32 [TB, Dp]

    recon_ref[...] = recon.astype(recon_ref.dtype)   # bf16, lane-dense store
    muvar_ref[...] = muvar.astype(muvar_ref.dtype)   # f32


def _default_batch_tile():
    """256 for v6e/v7x (256x256 MXU), 128 for v5e (4x 128x128 MXUs)."""
    try:
        kind = jax.devices()[0].device_kind.lower()
    except Exception:
        kind = ""
    if "v5e" in kind or "v5 lite" in kind or "v5litepod" in kind:
        return 128
    return 256


def _pick_tb(batch, tb):
    """Pick the batch tile: multiple of 8 (sublane), <= tb, never over-padding a tiny
    batch, and — when the batch allows — small enough that the grid has >= 2 steps so
    v7x's two TensorCores both get work on the 'parallel' batch axis."""
    tb = max(8, (tb // 8) * 8)
    tb = min(tb, _pad_to(batch, 8))           # don't pad a tiny batch up to a huge tile
    if batch > 8:
        half = _pad_to((batch + 1) // 2, 8)   # smallest tile that still gives nb >= 2
        tb = min(tb, half)
    return tb


def vae_forward(x, eps, params, *, tb=None):
    """x: [B, input_dim] f32, eps: [B, z_dim] f32 (~N(0,1), plays torch.randn_like).

    params: 9 (w, b) pairs with w stored (in, out), b stored (1, out), all f32.
    Returns (recon [B, input_dim], mu [B, z_dim], log_var [B, z_dim]) in f32."""
    B, input_dim = x.shape
    z_dim = eps.shape[1]
    hidden_dim = params[0][0].shape[1]

    Dp = _pad_to(input_dim)
    Hp = _pad_to(hidden_dim)
    H2p = _pad_to(2 * hidden_dim)
    Zp = _pad_to(z_dim)

    TB = _pick_tb(B, _default_batch_tile() if tb is None else tb)
    Bp = _pad_to(B, TB)
    nb = Bp // TB

    (w1, b1), (w2, b2), (we1, be1), (w3, b3), (w4, b4), \
        (w5, b5), (we2, be2), (w6, b6), (w7, b7) = params

    def wpad(w, rp, cp):
        return _pad2(w, rp, cp, jnp.bfloat16)

    def bpad(b, cp):
        return _pad2(b, 1, cp, jnp.float32)

    # Pad weights once (layout plumbing); fuse fc3/fc4 into one lane-dense projection.
    flat = [
        wpad(w1, Dp, Hp),   bpad(b1, Hp),
        wpad(w2, Hp, H2p),  bpad(b2, H2p),
        wpad(we1, H2p, Hp), bpad(be1, Hp),
        jnp.concatenate([wpad(w3, Hp, Zp), wpad(w4, Hp, Zp)], axis=1),   # (Hp, 2*Zp)
        jnp.concatenate([bpad(b3, Zp), bpad(b4, Zp)], axis=1),           # (1, 2*Zp)
        wpad(w5, Zp, Hp),   bpad(b5, Hp),
        wpad(we2, Hp, H2p), bpad(be2, H2p),
        wpad(w6, H2p, Hp),  bpad(b6, Hp),
        wpad(w7, Hp, Dp),   bpad(b7, Dp),
    ]

    # Pad activations: bf16 x, f32 eps (reparameterize stays in f32; eps MUST be zero-padded).
    x_p = _pad2(x, Bp, Dp, jnp.bfloat16)
    eps_p = _pad2(eps, Bp, Zp, jnp.float32)

    def batch_spec(cols):
        return pl.BlockSpec((TB, cols), lambda i: (i, 0))

    def const_spec(a):
        # Full-array block, constant index -> weights stay VMEM-resident across steps.
        # Single-buffered: never re-DMA'd, so a second buffer is pure VMEM waste.
        return pl.BlockSpec(a.shape, lambda i: (0, 0), pipeline_mode=pl.Buffered(1))

    in_specs = [batch_spec(Dp), batch_spec(Zp)] + [const_spec(a) for a in flat]
    out_specs = (
        pl.BlockSpec((TB, Dp), lambda i: (i, 0)),
        pl.BlockSpec((TB, 2 * Zp), lambda i: (i, 0)),
    )
    out_shapes = (
        jax.ShapeDtypeStruct((Bp, Dp), jnp.bfloat16),      # recon in bf16: halves writeback
        jax.ShapeDtypeStruct((Bp, 2 * Zp), jnp.float32),   # [mu | log_var] stays f32
    )

    # --- VMEM budget: weights single-buffered + double-buffered batch tiles + f32 temps ---
    def nbytes(a):
        return a.size * jnp.dtype(a.dtype).itemsize

    weight_bytes = sum(nbytes(a) for a in flat)
    tile_io = TB * Dp * 2 + TB * Zp * 4 + TB * Dp * 2 + TB * 2 * Zp * 4
    interm = 2 * TB * max(Dp, Hp, H2p, 2 * Zp) * 4
    vmem_limit = int(1.2 * (weight_bytes + 2 * tile_io + interm))
    vmem_limit = min(max(vmem_limit, 32 << 20), 120 << 20)

    # --- advisory cost estimate for XLA's scheduler ---
    flops = 2 * Bp * (Dp * Hp + Hp * H2p + H2p * Hp + Hp * 2 * Zp
                      + Zp * Hp + Hp * H2p + H2p * Hp + Hp * Dp)
    bytes_accessed = weight_bytes + Bp * Dp * 2 + Bp * Zp * 4 + Bp * Dp * 2 + Bp * 2 * Zp * 4
    cost = pl.CostEstimate(flops=flops, transcendentals=Bp * Zp,
                           bytes_accessed=bytes_accessed)

    recon_p, muvar_p = pl.pallas_call(
        functools.partial(_vae_kernel, Zp),
        grid=(nb,),
        out_shape=out_shapes,
        in_specs=in_specs,
        out_specs=out_specs,
        compiler_params=pltpu.CompilerParams(
            dimension_semantics=("parallel",),
            vmem_limit_bytes=vmem_limit,
        ),
        cost_estimate=cost,
    )(x_p, eps_p, *flat)

    recon = recon_p[:B, :input_dim].astype(jnp.float32)
    mu = muvar_p[:B, :z_dim]
    log_var = muvar_p[:B, Zp:Zp + z_dim]
    return recon, mu, log_var


def init_params(key, input_dim, hidden_dim, z_dim):
    """Deterministic nn.Linear-style init. Weights stored (in, out), biases (1, out)."""
    dims = [
        (input_dim, hidden_dim),       # fc1
        (hidden_dim, hidden_dim * 2),  # fc2
        (hidden_dim * 2, hidden_dim),  # fc_extra1
        (hidden_dim, z_dim),           # fc3 (mu)
        (hidden_dim, z_dim),           # fc4 (log_var)
        (z_dim, hidden_dim),           # fc5
        (hidden_dim, hidden_dim * 2),  # fc_extra2
        (hidden_dim * 2, hidden_dim),  # fc6
        (hidden_dim, input_dim),       # fc7
    ]
    params = []
    for (fan_in, fan_out) in dims:
        key, kw, kb = jax.random.split(key, 3)
        bound = 1.0 / jnp.sqrt(fan_in)
        w = jax.random.uniform(kw, (fan_in, fan_out), jnp.float32, -bound, bound)
        b = jax.random.uniform(kb, (1, fan_out), jnp.float32, -bound, bound)
        params.append((w, b))
    return params


def vae_forward_ref(x, eps, params):
    """Pure-JAX reference with the same bf16-weight / f32-accumulate numerics."""
    bf = jnp.bfloat16

    def lin(h, p):
        return jnp.dot(h.astype(bf), p[0].astype(bf),
                       preferred_element_type=jnp.float32) + p[1]

    h = jax.nn.relu(lin(x, params[0]))
    h = jax.nn.relu(lin(h, params[1]))
    h = jax.nn.relu(lin(h, params[2]))
    mu = lin(h, params[3])
    log_var = lin(h, params[4])
    z = mu + eps * jnp.exp(0.5 * log_var)
    h = jax.nn.relu(lin(z, params[5]))
    h = jax.nn.relu(lin(h, params[6]))
    h = jax.nn.relu(lin(h, params[7]))
    recon = lin(h, params[8])
    return recon, mu, log_var


if __name__ == "__main__":
    B, input_dim, hidden_dim, z_dim = 8, 16, 32, 8

    key = jax.random.PRNGKey(0)
    key, kx, keps, kp = jax.random.split(key, 4)

    x = jax.random.normal(kx, (B, input_dim), jnp.float32)
    # eps plays the role of torch.randn_like(std) in reparameterize.
    eps = jax.random.normal(keps, (B, z_dim), jnp.float32)
    params = init_params(kp, input_dim, hidden_dim, z_dim)

    recon, mu, log_var = vae_forward(x, eps, params)
    jax.block_until_ready((recon, mu, log_var))

    r_ref, mu_ref, lv_ref = vae_forward_ref(x, eps, params)
    assert jnp.allclose(recon, r_ref, atol=1e-2, rtol=1e-2), "recon mismatch"
    assert jnp.allclose(mu, mu_ref, atol=1e-2, rtol=1e-2), "mu mismatch"
    assert jnp.allclose(log_var, lv_ref, atol=1e-2, rtol=1e-2), "log_var mismatch"

    print("KERNEL_OK")
</pallas_src>

<mosaic_0001>
module attributes {stable_mosaic.version = 11 : i64} {
  func.func @_vae_kernel(%arg0: i32, %arg1: memref<8x128xbf16, #tpu.memory_space<vmem>>, %arg2: memref<8x128xf32, #tpu.memory_space<vmem>>, %arg3: memref<128x128xbf16, #tpu.memory_space<vmem>>, %arg4: memref<1x128xf32, #tpu.memory_space<vmem>>, %arg5: memref<128x128xbf16, #tpu.memory_space<vmem>>, %arg6: memref<1x128xf32, #tpu.memory_space<vmem>>, %arg7: memref<128x128xbf16, #tpu.memory_space<vmem>>, %arg8: memref<1x128xf32, #tpu.memory_space<vmem>>, %arg9: memref<128x256xbf16, #tpu.memory_space<vmem>>, %arg10: memref<1x256xf32, #tpu.memory_space<vmem>>, %arg11: memref<128x128xbf16, #tpu.memory_space<vmem>>, %arg12: memref<1x128xf32, #tpu.memory_space<vmem>>, %arg13: memref<128x128xbf16, #tpu.memory_space<vmem>>, %arg14: memref<1x128xf32, #tpu.memory_space<vmem>>, %arg15: memref<128x128xbf16, #tpu.memory_space<vmem>>, %arg16: memref<1x128xf32, #tpu.memory_space<vmem>>, %arg17: memref<128x128xbf16, #tpu.memory_space<vmem>>, %arg18: memref<1x128xf32, #tpu.memory_space<vmem>>, %arg19: memref<8x128xbf16, #tpu.memory_space<vmem>>, %arg20: memref<8x256xf32, #tpu.memory_space<vmem>>) attributes {dimension_semantics = [#tpu.dimension_semantics<parallel>], iteration_bounds = array<i64: 1>, scalar_prefetch = 0 : i64, scratch_operands = 0 : i64, tpu.core_type = #tpu.core_type<tc>, window_params = [{transform_indices = @transform_0, window_bounds = array<i64: 8, 128>}, {transform_indices = @transform_1, window_bounds = array<i64: 8, 128>}, {pipeline_mode = #tpu.pipeline_mode<synchronous>, transform_indices = @transform_2, window_bounds = array<i64: 128, 128>}, {pipeline_mode = #tpu.pipeline_mode<synchronous>, transform_indices = @transform_3, window_bounds = array<i64: 1, 128>}, {pipeline_mode = #tpu.pipeline_mode<synchronous>, transform_indices = @transform_4, window_bounds = array<i64: 128, 128>}, {pipeline_mode = #tpu.pipeline_mode<synchronous>, transform_indices = @transform_5, window_bounds = array<i64: 1, 128>}, {pipeline_mode = #tpu.pipeline_mode<synchronous>, transform_indices = @transform_6, window_bounds = array<i64: 128, 128>}, {pipeline_mode = #tpu.pipeline_mode<synchronous>, transform_indices = @transform_7, window_bounds = array<i64: 1, 128>}, {pipeline_mode = #tpu.pipeline_mode<synchronous>, transform_indices = @transform_8, window_bounds = array<i64: 128, 256>}, {pipeline_mode = #tpu.pipeline_mode<synchronous>, transform_indices = @transform_9, window_bounds = array<i64: 1, 256>}, {pipeline_mode = #tpu.pipeline_mode<synchronous>, transform_indices = @transform_10, window_bounds = array<i64: 128, 128>}, {pipeline_mode = #tpu.pipeline_mode<synchronous>, transform_indices = @transform_11, window_bounds = array<i64: 1, 128>}, {pipeline_mode = #tpu.pipeline_mode<synchronous>, transform_indices = @transform_12, window_bounds = array<i64: 128, 128>}, {pipeline_mode = #tpu.pipeline_mode<synchronous>, transform_indices = @transform_13, window_bounds = array<i64: 1, 128>}, {pipeline_mode = #tpu.pipeline_mode<synchronous>, transform_indices = @transform_14, window_bounds = array<i64: 128, 128>}, {pipeline_mode = #tpu.pipeline_mode<synchronous>, transform_indices = @transform_15, window_bounds = array<i64: 1, 128>}, {pipeline_mode = #tpu.pipeline_mode<synchronous>, transform_indices = @transform_16, window_bounds = array<i64: 128, 128>}, {pipeline_mode = #tpu.pipeline_mode<synchronous>, transform_indices = @transform_17, window_bounds = array<i64: 1, 128>}, {transform_indices = @transform_18, window_bounds = array<i64: 8, 128>}, {transform_indices = @transform_19, window_bounds = array<i64: 8, 256>}]} {
    %c0 = arith.constant 0 : index
    %c0_0 = arith.constant 0 : index
    %0 = vector.load %arg1[%c0, %c0_0] : memref<8x128xbf16, #tpu.memory_space<vmem>>, vector<8x128xbf16>
    %c0_1 = arith.constant 0 : index
    %c0_2 = arith.constant 0 : index
    %1 = vector.load %arg3[%c0_1, %c0_2] : memref<128x128xbf16, #tpu.memory_space<vmem>>, vector<128x128xbf16>
    %cst = arith.constant dense<0.000000e+00> : vector<8x128xf32>
    %2 = tpu.matmul %0, %1, %cst {dimension_numbers = #tpu.dot_dimension_numbers<[1], [0], [0], [1], [0, 0, 1, 1], [], []>} : vector<8x128xbf16>, vector<128x128xbf16>, vector<8x128xf32> -> vector<8x128xf32>
    %c0_3 = arith.constant 0 : index
    %c0_4 = arith.constant 0 : index
    %3 = vector.load %arg4[%c0_3, %c0_4] : memref<1x128xf32, #tpu.memory_space<vmem>>, vector<1x128xf32>
    %4 = vector.broadcast %3 : vector<1x128xf32> to vector<8x128xf32>
    %5 = arith.addf %2, %4 : vector<8x128xf32>
    %cst_5 = arith.constant 0.000000e+00 : f32
    %6 = vector.broadcast %cst_5 : f32 to vector<8x128xf32>
    %7 = arith.maximumf %5, %6 : vector<8x128xf32>
    %8 = arith.truncf %7 : vector<8x128xf32> to vector<8x128xbf16>
    %c0_6 = arith.constant 0 : index
    %c0_7 = arith.constant 0 : index
    %9 = vector.load %arg5[%c0_6, %c0_7] : memref<128x128xbf16, #tpu.memory_space<vmem>>, vector<128x128xbf16>
    %cst_8 = arith.constant dense<0.000000e+00> : vector<8x128xf32>
    %10 = tpu.matmul %8, %9, %cst_8 {dimension_numbers = #tpu.dot_dimension_numbers<[1], [0], [0], [1], [0, 0, 1, 1], [], []>} : vector<8x128xbf16>, vector<128x128xbf16>, vector<8x128xf32> -> vector<8x128xf32>
    %c0_9 = arith.constant 0 : index
    %c0_10 = arith.constant 0 : index
    %11 = vector.load %arg6[%c0_9, %c0_10] : memref<1x128xf32, #tpu.memory_space<vmem>>, vector<1x128xf32>
    %12 = vector.broadcast %11 : vector<1x128xf32> to vector<8x128xf32>
    %13 = arith.addf %10, %12 : vector<8x128xf32>
    %cst_11 = arith.constant 0.000000e+00 : f32
    %14 = vector.broadcast %cst_11 : f32 to vector<8x128xf32>
    %15 = arith.maximumf %13, %14 : vector<8x128xf32>
    %16 = arith.truncf %15 : vector<8x128xf32> to vector<8x128xbf16>
    %c0_12 = arith.constant 0 : index
    %c0_13 = arith.constant 0 : index
    %17 = vector.load %arg7[%c0_12, %c0_13] : memref<128x128xbf16, #tpu.memory_space<vmem>>, vector<128x128xbf16>
    %cst_14 = arith.constant dense<0.000000e+00> : vector<8x128xf32>
    %18 = tpu.matmul %16, %17, %cst_14 {dimension_numbers = #tpu.dot_dimension_numbers<[1], [0], [0], [1], [0, 0, 1, 1], [], []>} : vector<8x128xbf16>, vector<128x128xbf16>, vector<8x128xf32> -> vector<8x128xf32>
    %c0_15 = arith.constant 0 : index
    %c0_16 = arith.constant 0 : index
    %19 = vector.load %arg8[%c0_15, %c0_16] : memref<1x128xf32, #tpu.memory_space<vmem>>, vector<1x128xf32>
    %20 = vector.broadcast %19 : vector<1x128xf32> to vector<8x128xf32>
    %21 = arith.addf %18, %20 : vector<8x128xf32>
    %cst_17 = arith.constant 0.000000e+00 : f32
    %22 = vector.broadcast %cst_17 : f32 to vector<8x128xf32>
    %23 = arith.maximumf %21, %22 : vector<8x128xf32>
    %24 = arith.truncf %23 : vector<8x128xf32> to vector<8x128xbf16>
    %c0_18 = arith.constant 0 : index
    %c0_19 = arith.constant 0 : index
    %25 = vector.load %arg9[%c0_18, %c0_19] : memref<128x256xbf16, #tpu.memory_space<vmem>>, vector<128x256xbf16>
    %cst_20 = arith.constant dense<0.000000e+00> : vector<8x256xf32>
    %26 = tpu.matmul %24, %25, %cst_20 {dimension_numbers = #tpu.dot_dimension_numbers<[1], [0], [0], [1], [0, 0, 1, 1], [], []>} : vector<8x128xbf16>, vector<128x256xbf16>, vector<8x256xf32> -> vector<8x256xf32>
    %c0_21 = arith.constant 0 : index
    %c0_22 = arith.constant 0 : index
    %27 = vector.load %arg10[%c0_21, %c0_22] : memref<1x256xf32, #tpu.memory_space<vmem>>, vector<1x256xf32>
    %28 = vector.broadcast %27 : vector<1x256xf32> to vector<8x256xf32>
    %29 = arith.addf %26, %28 : vector<8x256xf32>
    %30 = vector.extract_strided_slice %29 {offsets = [0, 0], sizes = [8, 128], strides = [1, 1]} : vector<8x256xf32> to vector<8x128xf32>
    %31 = vector.extract_strided_slice %29 {offsets = [0, 128], sizes = [8, 128], strides = [1, 1]} : vector<8x256xf32> to vector<8x128xf32>
    %cst_23 = arith.constant 5.000000e-01 : f32
    %32 = vector.broadcast %cst_23 : f32 to vector<8x128xf32>
    %33 = arith.mulf %32, %31 : vector<8x128xf32>
    %34 = math.exp %33 : vector<8x128xf32>
    %c0_24 = arith.constant 0 : index
    %c0_25 = arith.constant 0 : index
    %35 = vector.load %arg2[%c0_24, %c0_25] : memref<8x128xf32, #tpu.memory_space<vmem>>, vector<8x128xf32>
    %36 = arith.mulf %35, %34 : vector<8x128xf32>
    %37 = arith.addf %30, %36 : vector<8x128xf32>
    %38 = arith.truncf %37 : vector<8x128xf32> to vector<8x128xbf16>
    %c0_26 = arith.constant 0 : index
    %c0_27 = arith.constant 0 : index
    %39 = vector.load %arg11[%c0_26, %c0_27] : memref<128x128xbf16, #tpu.memory_space<vmem>>, vector<128x128xbf16>
    %cst_28 = arith.constant dense<0.000000e+00> : vector<8x128xf32>
    %40 = tpu.matmul %38, %39, %cst_28 {dimension_numbers = #tpu.dot_dimension_numbers<[1], [0], [0], [1], [0, 0, 1, 1], [], []>} : vector<8x128xbf16>, vector<128x128xbf16>, vector<8x128xf32> -> vector<8x128xf32>
    %c0_29 = arith.constant 0 : index
    %c0_30 = arith.constant 0 : index
    %41 = vector.load %arg12[%c0_29, %c0_30] : memref<1x128xf32, #tpu.memory_space<vmem>>, vector<1x128xf32>
    %42 = vector.broadcast %41 : vector<1x128xf32> to vector<8x128xf32>
    %43 = arith.addf %40, %42 : vector<8x128xf32>
    %cst_31 = arith.constant 0.000000e+00 : f32
    %44 = vector.broadcast %cst_31 : f32 to vector<8x128xf32>
    %45 = arith.maximumf %43, %44 : vector<8x128xf32>
    %46 = arith.truncf %45 : vector<8x128xf32> to vector<8x128xbf16>
    %c0_32 = arith.constant 0 : index
    %c0_33 = arith.constant 0 : index
    %47 = vector.load %arg13[%c0_32, %c0_33] : memref<128x128xbf16, #tpu.memory_space<vmem>>, vector<128x128xbf16>
    %cst_34 = arith.constant dense<0.000000e+00> : vector<8x128xf32>
    %48 = tpu.matmul %46, %47, %cst_34 {dimension_numbers = #tpu.dot_dimension_numbers<[1], [0], [0], [1], [0, 0, 1, 1], [], []>} : vector<8x128xbf16>, vector<128x128xbf16>, vector<8x128xf32> -> vector<8x128xf32>
    %c0_35 = arith.constant 0 : index
    %c0_36 = arith.constant 0 : index
    %49 = vector.load %arg14[%c0_35, %c0_36] : memref<1x128xf32, #tpu.memory_space<vmem>>, vector<1x128xf32>
    %50 = vector.broadcast %49 : vector<1x128xf32> to vector<8x128xf32>
    %51 = arith.addf %48, %50 : vector<8x128xf32>
    %cst_37 = arith.constant 0.000000e+00 : f32
    %52 = vector.broadcast %cst_37 : f32 to vector<8x128xf32>
    %53 = arith.maximumf %51, %52 : vector<8x128xf32>
    %54 = arith.truncf %53 : vector<8x128xf32> to vector<8x128xbf16>
    %c0_38 = arith.constant 0 : index
    %c0_39 = arith.constant 0 : index
    %55 = vector.load %arg15[%c0_38, %c0_39] : memref<128x128xbf16, #tpu.memory_space<vmem>>, vector<128x128xbf16>
    %cst_40 = arith.constant dense<0.000000e+00> : vector<8x128xf32>
    %56 = tpu.matmul %54, %55, %cst_40 {dimension_numbers = #tpu.dot_dimension_numbers<[1], [0], [0], [1], [0, 0, 1, 1], [], []>} : vector<8x128xbf16>, vector<128x128xbf16>, vector<8x128xf32> -> vector<8x128xf32>
    %c0_41 = arith.constant 0 : index
    %c0_42 = arith.constant 0 : index
    %57 = vector.load %arg16[%c0_41, %c0_42] : memref<1x128xf32, #tpu.memory_space<vmem>>, vector<1x128xf32>
    %58 = vector.broadcast %57 : vector<1x128xf32> to vector<8x128xf32>
    %59 = arith.addf %56, %58 : vector<8x128xf32>
    %cst_43 = arith.constant 0.000000e+00 : f32
    %60 = vector.broadcast %cst_43 : f32 to vector<8x128xf32>
    %61 = arith.maximumf %59, %60 : vector<8x128xf32>
    %62 = arith.truncf %61 : vector<8x128xf32> to vector<8x128xbf16>
    %c0_44 = arith.constant 0 : index
    %c0_45 = arith.constant 0 : index
    %63 = vector.load %arg17[%c0_44, %c0_45] : memref<128x128xbf16, #tpu.memory_space<vmem>>, vector<128x128xbf16>
    %cst_46 = arith.constant dense<0.000000e+00> : vector<8x128xf32>
    %64 = tpu.matmul %62, %63, %cst_46 {dimension_numbers = #tpu.dot_dimension_numbers<[1], [0], [0], [1], [0, 0, 1, 1], [], []>} : vector<8x128xbf16>, vector<128x128xbf16>, vector<8x128xf32> -> vector<8x128xf32>
    %c0_47 = arith.constant 0 : index
    %c0_48 = arith.constant 0 : index
    %65 = vector.load %arg18[%c0_47, %c0_48] : memref<1x128xf32, #tpu.memory_space<vmem>>, vector<1x128xf32>
    %66 = vector.broadcast %65 : vector<1x128xf32> to vector<8x128xf32>
    %67 = arith.addf %64, %66 : vector<8x128xf32>
    %68 = arith.truncf %67 : vector<8x128xf32> to vector<8x128xbf16>
    %c0_49 = arith.constant 0 : index
    %c0_50 = arith.constant 0 : index
    %69 = vector.load %arg19[%c0_49, %c0_50] : memref<8x128xbf16, #tpu.memory_space<vmem>>, vector<8x128xbf16>
    tpu.vector_store %arg19[%c0_49, %c0_50], %68 {strides = array<i32>} : memref<8x128xbf16, #tpu.memory_space<vmem>>, vector<8x128xbf16>,
    %c0_51 = arith.constant 0 : index
    %c0_52 = arith.constant 0 : index
    %70 = vector.load %arg20[%c0_51, %c0_52] : memref<8x256xf32, #tpu.memory_space<vmem>>, vector<8x256xf32>
    tpu.vector_store %arg20[%c0_51, %c0_52], %29 {strides = array<i32>} : memref<8x256xf32, #tpu.memory_space<vmem>>, vector<8x256xf32>,
    return
  }
  func.func @transform_0(%arg0: i32) -> (i32, i32) {
    %c0_i32 = arith.constant 0 : i32
    %c0_i32_0 = arith.constant 0 : i32
    return %arg0, %c0_i32 : i32, i32
  }
  func.func @transform_1(%arg0: i32) -> (i32, i32) {
    %c0_i32 = arith.constant 0 : i32
    %c0_i32_0 = arith.constant 0 : i32
    return %arg0, %c0_i32 : i32, i32
  }
  func.func @transform_2(%arg0: i32) -> (i32, i32) {
    %c0_i32 = arith.constant 0 : i32
    %c0_i32_0 = arith.constant 0 : i32
    %c0_i32_1 = arith.constant 0 : i32
    return %c0_i32, %c0_i32_0 : i32, i32
  }
  func.func @transform_3(%arg0: i32) -> (i32, i32) {
    %c0_i32 = arith.constant 0 : i32
    %c0_i32_0 = arith.constant 0 : i32
    %c0_i32_1 = arith.constant 0 : i32
    return %c0_i32, %c0_i32_0 : i32, i32
  }
  func.func @transform_4(%arg0: i32) -> (i32, i32) {
    %c0_i32 = arith.constant 0 : i32
    %c0_i32_0 = arith.constant 0 : i32
    %c0_i32_1 = arith.constant 0 : i32
    return %c0_i32, %c0_i32_0 : i32, i32
  }
  func.func @transform_5(%arg0: i32) -> (i32, i32) {
    %c0_i32 = arith.constant 0 : i32
    %c0_i32_0 = arith.constant 0 : i32
    %c0_i32_1 = arith.constant 0 : i32
    return %c0_i32, %c0_i32_0 : i32, i32
  }
  func.func @transform_6(%arg0: i32) -> (i32, i32) {
    %c0_i32 = arith.constant 0 : i32
    %c0_i32_0 = arith.constant 0 : i32
    %c0_i32_1 = arith.constant 0 : i32
    return %c0_i32, %c0_i32_0 : i32, i32
  }
  func.func @transform_7(%arg0: i32) -> (i32, i32) {
    %c0_i32 = arith.constant 0 : i32
    %c0_i32_0 = arith.constant 0 : i32
    %c0_i32_1 = arith.constant 0 : i32
    return %c0_i32, %c0_i32_0 : i32, i32
  }
  func.func @transform_8(%arg0: i32) -> (i32, i32) {
    %c0_i32 = arith.constant 0 : i32
    %c0_i32_0 = arith.constant 0 : i32
    %c0_i32_1 = arith.constant 0 : i32
    return %c0_i32, %c0_i32_0 : i32, i32
  }
  func.func @transform_9(%arg0: i32) -> (i32, i32) {
    %c0_i32 = arith.constant 0 : i32
    %c0_i32_0 = arith.constant 0 : i32
    %c0_i32_1 = arith.constant 0 : i32
    return %c0_i32, %c0_i32_0 : i32, i32
  }
  func.func @transform_10(%arg0: i32) -> (i32, i32) {
    %c0_i32 = arith.constant 0 : i32
    %c0_i32_0 = arith.constant 0 : i32
    %c0_i32_1 = arith.constant 0 : i32
    return %c0_i32, %c0_i32_0 : i32, i32
  }
  func.func @transform_11(%arg0: i32) -> (i32, i32) {
    %c0_i32 = arith.constant 0 : i32
    %c0_i32_0 = arith.constant 0 : i32
    %c0_i32_1 = arith.constant 0 : i32
    return %c0_i32, %c0_i32_0 : i32, i32
  }
  func.func @transform_12(%arg0: i32) -> (i32, i32) {
    %c0_i32 = arith.constant 0 : i32
    %c0_i32_0 = arith.constant 0 : i32
    %c0_i32_1 = arith.constant 0 : i32
    return %c0_i32, %c0_i32_0 : i32, i32
  }
  func.func @transform_13(%arg0: i32) -> (i32, i32) {
    %c0_i32 = arith.constant 0 : i32
    %c0_i32_0 = arith.constant 0 : i32
    %c0_i32_1 = arith.constant 0 : i32
    return %c0_i32, %c0_i32_0 : i32, i32
  }
  func.func @transform_14(%arg0: i32) -> (i32, i32) {
    %c0_i32 = arith.constant 0 : i32
    %c0_i32_0 = arith.constant 0 : i32
    %c0_i32_1 = arith.constant 0 : i32
    return %c0_i32, %c0_i32_0 : i32, i32
  }
  func.func @transform_15(%arg0: i32) -> (i32, i32) {
    %c0_i32 = arith.constant 0 : i32
    %c0_i32_0 = arith.constant 0 : i32
    %c0_i32_1 = arith.constant 0 : i32
    return %c0_i32, %c0_i32_0 : i32, i32
  }
  func.func @transform_16(%arg0: i32) -> (i32, i32) {
    %c0_i32 = arith.constant 0 : i32
    %c0_i32_0 = arith.constant 0 : i32
    %c0_i32_1 = arith.constant 0 : i32
    return %c0_i32, %c0_i32_0 : i32, i32
  }
  func.func @transform_17(%arg0: i32) -> (i32, i32) {
    %c0_i32 = arith.constant 0 : i32
    %c0_i32_0 = arith.constant 0 : i32
    %c0_i32_1 = arith.constant 0 : i32
    return %c0_i32, %c0_i32_0 : i32, i32
  }
  func.func @transform_18(%arg0: i32) -> (i32, i32) {
    %c0_i32 = arith.constant 0 : i32
    %c0_i32_0 = arith.constant 0 : i32
    return %arg0, %c0_i32 : i32, i32
  }
  func.func @transform_19(%arg0: i32) -> (i32, i32) {
    %c0_i32 = arith.constant 0 : i32
    %c0_i32_0 = arith.constant 0 : i32
    return %arg0, %c0_i32 : i32, i32
  }
}

</mosaic_0001>

<bundles_post_ra>
// kernel: tpu_custom_call.1
= control target key start
LH: loop header
LB: loop body
LE: loop exit
PB: predicated region body
PF: predicated region fallthrough
CT: control target
= control target key end

     0   :  { %s1858_s0 = inlined_call_operand.hbm [shape: bf16[8,128], index: 0, kind: input, shape index: {}]   ;;  %s1859_s1 = inlined_call_operand.hbm [shape: f32[8,128], index: 1, kind: input, shape index: {}]   ;;  %s1860_s2 = inlined_call_operand.hbm [shape: bf16[128,128], index: 2, kind: input, shape index: {}]   ;;  %s1861_s3 = inlined_call_operand.vmem [shape: f32[1,128], index: 3, kind: input, shape index: {}]   ;;  %s1862_s4 = inlined_call_operand.hbm [shape: bf16[128,128], index: 4, kind: input, shape index: {}]   ;;  %s1863_s5 = inlined_call_operand.vmem [shape: f32[1,128], index: 5, kind: input, shape index: {}]   ;;  %s1864_s6 = inlined_call_operand.hbm [shape: bf16[128,128], index: 6, kind: input, shape index: {}]   ;;  %s1865_s7 = inlined_call_operand.vmem [shape: f32[1,128], index: 7, kind: input, shape index: {}]   ;;  %s1866_s8 = inlined_call_operand.hbm [shape: bf16[128,256], index: 8, kind: input, shape index: {}]   ;;  %s1867_s9 = inlined_call_operand.vmem [shape: f32[1,256], index: 9, kind: input, shape index: {}]   ;;  %s1868_s10 = inlined_call_operand.hbm [shape: bf16[128,128], index: 10, kind: input, shape index: {}]   ;;  %s1869_s11 = inlined_call_operand.vmem [shape: f32[1,128], index: 11, kind: input, shape index: {}]   ;;  %s1870_s12 = inlined_call_operand.hbm [shape: bf16[128,128], index: 12, kind: input, shape index: {}]   ;;  %s1871_s13 = inlined_call_operand.vmem [shape: f32[1,128], index: 13, kind: input, shape index: {}]   ;;  %s1872_s14 = inlined_call_operand.hbm [shape: bf16[128,128], index: 14, kind: input, shape index: {}]   ;;  %s1873_s15 = inlined_call_operand.vmem [shape: f32[1,128], index: 15, kind: input, shape index: {}]   ;;  %s1874_s16 = inlined_call_operand.hbm [shape: bf16[128,128], index: 16, kind: input, shape index: {}]   ;;  %s1875_s17 = inlined_call_operand.vmem [shape: f32[1,128], index: 17, kind: input, shape index: {}]   ;;  %s1876_s18 = inlined_call_operand.hbm [shape: bf16[8,128], index: 18, kind: output, shape index: {0}]   ;;  %s1877_s19 = inlined_call_operand.hbm [shape: f32[8,256], index: 19, kind: output, shape index: {1}]  }
   0x1   :  { %1878 = sst [smem:[#allocation30_spill]] %s1858_s0 }
   0x2   :  { %1879 = sst [smem:[#allocation31_spill]] %s1859_s1 }
   0x3   :  { %1880 = sst [smem:[#allocation32_spill]] %s1860_s2 }
   0x4   :  { %1881 = sst [smem:[#allocation33_spill]] %s1861_s3 }
   0x5   :  { %1882 = sst [smem:[#allocation34_spill]] %s1876_s18 }
   0x6   :  { %25 = vsyncpa [#allocation3], 0 }
   0x7   :  { %26 = vsyncpa [#allocation6], 0 }
   0x8   :  { %27 = vsyncpa [#allocation9], 0 }
   0x9   :  { %28 = vsyncpa [#allocation12], 0 }
   0xa   :  { %29 = vsyncpa [#allocation15], 0 }
   0xb   :  { %30 = vsyncpa [#allocation18], 0 }
   0xc   :  { %31 = vsyncpa [#allocation4], 0  ;;  %s1883_s20 = sld [smem:[#allocation31_spill]] }
  0x12   :  { %s49_s21 = sshll.u32 %s1883_s20, 4  ;;  %s50_s21 = int_to_ptr.hbm [resolvable:$true] %s49_s21 }
  0x13   :  { %32 = vsyncpa [#allocation21], 0  ;;  %s1661_s1 = smov [#allocation5]   ;;  %s74_s24 = sshll.u32 %s1862_s4, 4  ;;  %s75_s24 = int_to_ptr.hbm [resolvable:$true] %s74_s24 }
  0x14   :  { %s51_s22 = sshll.u32 %s1661_s1, 4  ;;  %s1662_s25 = smov [#allocation8]   ;;  %s52_s22 = int_to_ptr.vmem [resolvable:$true] %s51_s22 }
  0x15   :  { %54 = dma.hbm_to_vmem [thread:$0]  %s50_s21, 128, %s52_s22, [#allocation6]  }
  0x16   :  { %s76_s3 = sshll.u32 %s1662_s25, 4  ;;  %s104_s28 = sshll.u32 %s1866_s8, 4  ;;  %s77_s3 = int_to_ptr.vmem [resolvable:$true] %s76_s3  ;;  %s105_s28 = int_to_ptr.hbm [resolvable:$true] %s104_s28 }
  0x17   :  { %s1663_s29 = smov 64   ;;  %s1664_s0 = smov 4  }
  0x18   :  { %82 = dma.hbm_to_vmem [thread:$0]  %s75_s24, 1024, %s77_s3, [#allocation9], %s1663_s29, %s1663_s29, %s1664_s0  }
  0x19   :  { %s1665_s30 = smov [#allocation11]   ;;  %s134_s1 = sshll.u32 %s1870_s12, 4  ;;  %s135_s1 = int_to_ptr.hbm [resolvable:$true] %s134_s1 }
  0x1a   :  { %s106_s20 = sshll.u32 %s1665_s30, 4  ;;  %s1666_s22 = smov 128   ;;  %s107_s20 = int_to_ptr.vmem [resolvable:$true] %s106_s20 }
  0x1b   :  { %s1667_s2 = smov 8   ;;  %s1668_s8 = smov [#allocation14]  }
  0x1c   :  { %112 = dma.hbm_to_vmem [thread:$0]  %s105_s28, 2048, %s107_s20, [#allocation12], %s1666_s22, %s1666_s22, %s1667_s2  }
  0x1d   :  { %s136_s23 = sshll.u32 %s1668_s8, 4  ;;  %s1884_s27 = sld [smem:[#allocation30_spill]]  ;;  %s137_s23 = int_to_ptr.vmem [resolvable:$true] %s136_s23 }
  0x1e   :  { %142 = dma.hbm_to_vmem [thread:$0]  %s135_s1, 1024, %s137_s23, [#allocation15], %s1663_s29, %s1663_s29, %s1664_s0  }
  0x1f   :  { %s1885_s30 = sld [smem:[#allocation32_spill]]  ;;  %s1669_s21 = smov [#allocation2]  }
  0x20   :  { %s40_s4 = sshll.u32 %s1669_s21, 4  ;;  %s1670_s28 = smov [#allocation7]   ;;  %s41_s4 = int_to_ptr.vmem [resolvable:$true] %s40_s4 }
  0x21   :  { %s61_s20 = sshll.u32 %s1670_s28, 4  ;;  %s89_s8 = sshll.u32 %s1864_s6, 4  ;;  %s62_s20 = int_to_ptr.vmem [resolvable:$true] %s61_s20  ;;  %s90_s8 = int_to_ptr.hbm [resolvable:$true] %s89_s8 }
  0x22   :  { %s119_s25 = sshll.u32 %s1868_s10, 4  ;;  %s1671_s26 = smov [#allocation10]   ;;  %s120_s25 = int_to_ptr.hbm [resolvable:$true] %s119_s25 }
  0x23   :  { %s38_s18 = sshll.u32 %s1884_s27, 4  ;;  %s91_s27 = sshll.u32 %s1671_s26, 4  ;;  %s39_s18 = int_to_ptr.hbm [resolvable:$true] %s38_s18  ;;  %s92_s27 = int_to_ptr.vmem [resolvable:$true] %s91_s27 }
  0x24   :  { %43 = dma.hbm_to_vmem [thread:$0]  %s39_s18, 64, %s41_s4, [#allocation3]  }
  0x25   :  { %s59_s12 = sshll.u32 %s1885_s30, 4  ;;  %s1672_s18 = smov [#allocation13]   ;;  %s60_s12 = int_to_ptr.hbm [resolvable:$true] %s59_s12 }
  0x26   :  { %67 = dma.hbm_to_vmem [thread:$0]  %s60_s12, 1024, %s62_s20, [#allocation6], %s1663_s29, %s1663_s29, %s1664_s0  }
  0x27   :  { %97 = dma.hbm_to_vmem [thread:$0]  %s90_s8, 1024, %s92_s27, [#allocation9], %s1663_s29, %s1663_s29, %s1664_s0  }
  0x28   :  { %s121_s6 = sshll.u32 %s1672_s18, 4  ;;  %s149_s30 = sshll.u32 %s1872_s14, 4  ;;  %s122_s6 = int_to_ptr.vmem [resolvable:$true] %s121_s6  ;;  %s150_s30 = int_to_ptr.hbm [resolvable:$true] %s149_s30 }
  0x29   :  { %127 = dma.hbm_to_vmem [thread:$0]  %s120_s25, 1024, %s122_s6, [#allocation12], %s1663_s29, %s1663_s29, %s1664_s0  }
  0x2a   :  { %s164_s21 = sshll.u32 %s1874_s16, 4  ;;  %s1673_s4 = smov [#allocation16]   ;;  %s165_s21 = int_to_ptr.hbm [resolvable:$true] %s164_s21 }
  0x2b   :  { %s151_s28 = sshll.u32 %s1673_s4, 4  ;;  %s1674_s20 = smov [#allocation17]   ;;  %s152_s28 = int_to_ptr.vmem [resolvable:$true] %s151_s28 }
  0x2c   :  { %157 = dma.hbm_to_vmem [thread:$0]  %s150_s30, 1024, %s152_s28, [#allocation15], %s1663_s29, %s1663_s29, %s1664_s0  }
  0x2d   :  { %s166_s14 = sshll.u32 %s1674_s20, 4  ;;  %s167_s14 = int_to_ptr.vmem [resolvable:$true] %s166_s14 }
  0x2e   :  { %172 = dma.hbm_to_vmem [thread:$0]  %s165_s21, 1024, %s167_s14, [#allocation18], %s1663_s29, %s1663_s29, %s1664_s0  }
  0x2f   :  { %1645 = dma.done.wait [#allocation3], 64  }
  0x30   :  { %1646 = vsyncadd [#allocation3], 4294967232 }
  0x31   :  { %1647 = dma.done.wait [#allocation6], 1152  }
  0x32   :  { %1648 = vsyncadd [#allocation6], 4294966144 }
  0x33   :  { %1649 = dma.done.wait [#allocation9], 2048  }
  0x34   :  { %1650 = vsyncadd [#allocation9], 4294965248 }
  0x35   :  { %1651 = dma.done.wait [#allocation12], 3072  }
  0x36   :  { %1652 = vsyncadd [#allocation12], 4294964224 }
  0x37   :  { %1653 = dma.done.wait [#allocation15], 2048  }
  0x38   :  { %1654 = vsyncadd [#allocation15], 4294965248 }
  0x39   :  { %1655 = dma.done.wait [#allocation18], 1024  }
  0x3a   :  { %1656 = vsyncadd [#allocation18], 4294966272  ;;  %v1267_v0 = vld [vmem:[#allocation7 + $0x38] sm:$0xff]  ;;  %v1266_v1 = vld [vmem:[#allocation7 + $0x30] sm:$0xff]  ;;  %s1886_s0 = sld [smem:[#allocation33_spill]]  ;;  %s952_s3 = sshll.u32 %s1877_s19, 4  ;;  %s953_s3 = int_to_ptr.hbm [resolvable:$true] %s952_s3 }
  0x3b   :  { %284 = vmatpush.bf16.msra.mxu0 %v1267_v0  ;;  %v1275_v2 = vld [vmem:[#allocation8 + $0x38] sm:$0xff]  ;;  %v1265_v3 = vld [vmem:[#allocation7 + $0x28] sm:$0xff]  ;;  %v1274_v4 = vld [vmem:[#allocation8 + $0x30] sm:$0xff]  ;;  %s1887_s28 = sld [smem:[#allocation34_spill]] }
  0x3c   :  { %367 = vmatpush.bf16.msra.mxu1 %v1275_v2  ;;  %v1273_v5 = vld [vmem:[#allocation8 + $0x28] sm:$0xff]  ;;  %v1264_v6 = vld [vmem:[#allocation7 + $0x20] sm:$0xff]  ;;  %v1263_v8 = vld [vmem:[#allocation7 + $0x18] sm:$0xff] }
  0x3d   :  { %v1272_v7 = vld [vmem:[#allocation8 + $0x20] sm:$0xff]  ;;  %v1271_v9 = vld [vmem:[#allocation8 + $0x18] sm:$0xff]  ;;  %v1262_v10 = vld [vmem:[#allocation7 + $0x10] sm:$0xff] }
  0x3e   :  { %v1270_v11 = vld [vmem:[#allocation8 + $0x10] sm:$0xff]  ;;  %v1261_v12 = vld [vmem:[#allocation7 + $0x8] sm:$0xff]  ;;  %v1260_v13 = vld [vmem:[#allocation7] sm:$0xff] }
  0x3f   :  { %285 = vmatpush.bf16.msra.mxu0 %v1266_v1  ;;  %v215_v14 = vld [vmem:[#allocation2] sm:$0xf]  ;;  %v1269_v15 = vld [vmem:[#allocation8 + $0x8] sm:$0xff]  ;;  %v1268_v16 = vld [vmem:[#allocation8] sm:$0xff] }
  0x40   :  { %368 = vmatpush.bf16.msra.mxu1 %v1274_v4  ;;  %v1283_v17 = vld [vmem:[#allocation10 + $0x38] sm:$0xff]  ;;  %v1282_v18 = vld [vmem:[#allocation10 + $0x30] sm:$0xff]  ;;  %v1281_v19 = vld [vmem:[#allocation10 + $0x28] sm:$0xff] }
  0x41   :  { %450 = vmatpush.bf16.msra.mxu2 %v1283_v17  ;;  %v1280_v20 = vld [vmem:[#allocation10 + $0x20] sm:$0xff]  ;;  %v1279_v21 = vld [vmem:[#allocation10 + $0x18] sm:$0xff]  ;;  %v1278_v22 = vld [vmem:[#allocation10 + $0x10] sm:$0xff]  ;;  %s941_s20 = sshll.u32 %s1887_s28, 4  ;;  %s942_s20 = int_to_ptr.hbm [resolvable:$true] %s941_s20 }
  0x42   :  { %v1348_v23 = vld [vmem:[%s1886_s0] ss:$0 sm:$0xff]  ;;  %v1277_v29 = vld [vmem:[#allocation10 + $0x8] sm:$0xff]  ;;  %v1276_v30 = vld [vmem:[#allocation10] sm:$0xff] }
  0x43   :  { %286 = vmatpush.bf16.msra.mxu0 %v1265_v3  ;;  %v1126_v31 = vld [vmem:[#allocation11 + $0x70] sm:$0xf]  ;;  %v1299_v32 = vld [vmem:[#allocation11 + $0x74] sm:$0xf0]  ;;  %v1298_v33 = vld [vmem:[#allocation11 + $0x74] sm:$0xf] }
  0x44   :  { %369 = vmatpush.bf16.msra.mxu1 %v1273_v5  ;;  %v1127_v34 = vor.u32 %v1299_v32, %v1126_v31  ;;  %v1128_v35 = vld [vmem:[#allocation11 + $0x78] sm:$0xf0]  ;;  %v1118_v36 = vld [vmem:[#allocation11 + $0x60] sm:$0xf]  ;;  %v1297_v37 = vld [vmem:[#allocation11 + $0x64] sm:$0xf0] }
  0x45   :  { %451 = vmatpush.bf16.msra.mxu2 %v1282_v18  ;;  %v1131_v38 = vor.u32 %v1298_v33, %v1128_v35  ;;  %v1296_v39 = vld [vmem:[#allocation11 + $0x64] sm:$0xf]  ;;  %v1120_v40 = vld [vmem:[#allocation11 + $0x68] sm:$0xf0]  ;;  %v1119_v41 = vor.u32 %v1297_v37, %v1118_v36  ;;  %v1110_v43 = vld [vmem:[#allocation11 + $0x50] sm:$0xf] }
  0x46   :  { %567 = vmatpush.bf16.msra.mxu3 %v1127_v34  ;;  %v1123_v42 = vor.u32 %v1296_v39, %v1120_v40  ;;  %v1295_v44 = vld [vmem:[#allocation11 + $0x54] sm:$0xf0]  ;;  %v1294_v45 = vld [vmem:[#allocation11 + $0x54] sm:$0xf]  ;;  %v1112_v46 = vld [vmem:[#allocation11 + $0x58] sm:$0xf0] }
  0x47   :  { %287 = vmatpush.bf16.msra.mxu0 %v1264_v6  ;;  %v1111_v47 = vor.u32 %v1295_v44, %v1110_v43  ;;  %v1115_v48 = vor.u32 %v1294_v45, %v1112_v46  ;;  %v1102_v49 = vld [vmem:[#allocation11 + $0x40] sm:$0xf]  ;;  %v1293_v50 = vld [vmem:[#allocation11 + $0x44] sm:$0xf0]  ;;  %v1292_v51 = vld [vmem:[#allocation11 + $0x44] sm:$0xf] }
  0x48   :  { %370 = vmatpush.bf16.msra.mxu1 %v1272_v7  ;;  %v1104_v52 = vld [vmem:[#allocation11 + $0x48] sm:$0xf0]  ;;  %v1103_v53 = vor.u32 %v1293_v50, %v1102_v49  ;;  %v1094_v55 = vld [vmem:[#allocation11 + $0x30] sm:$0xf]  ;;  %v1291_v56 = vld [vmem:[#allocation11 + $0x34] sm:$0xf0] }
  0x49   :  { %452 = vmatpush.bf16.msra.mxu2 %v1281_v19  ;;  %v1107_v54 = vor.u32 %v1292_v51, %v1104_v52  ;;  %v1290_v57 = vld [vmem:[#allocation11 + $0x34] sm:$0xf]  ;;  %v1096_v58 = vld [vmem:[#allocation11 + $0x38] sm:$0xf0]  ;;  %v1095_v59 = vor.u32 %v1291_v56, %v1094_v55  ;;  %v1086_v61 = vld [vmem:[#allocation11 + $0x20] sm:$0xf] }
  0x4a   :  { %568 = vmatpush.bf16.msra.mxu3 %v1119_v41  ;;  %v1099_v60 = vor.u32 %v1290_v57, %v1096_v58  ;;  %v1289_v62 = vld [vmem:[#allocation11 + $0x24] sm:$0xf0]  ;;  %v1288_v63 = vld [vmem:[#allocation11 + $0x24] sm:$0xf]  ;;  %v1088_v0 = vld [vmem:[#allocation11 + $0x28] sm:$0xf0] }
  0x4b   :  { %288 = vmatpush.bf16.msra.mxu0 %v1263_v8  ;;  %v1087_v1 = vor.u32 %v1289_v62, %v1086_v61  ;;  %v1091_v2 = vor.u32 %v1288_v63, %v1088_v0  ;;  %v1349_v3 = vld [vmem:[%s1863_s5] ss:$0 sm:$0xff]  ;;  %v1284_v17 = vld [vmem:[#allocation11 + $0x4] sm:$0xf]  ;;  %v1072_v19 = vld [vmem:[#allocation11 + $0x8] sm:$0xf0] }
  0x4c   :  { %371 = vmatpush.bf16.msra.mxu1 %v1271_v9  ;;  %v1078_v9 = vld [vmem:[#allocation11 + $0x10] sm:$0xf]  ;;  %v1303_v31 = vld [vmem:[#allocation13 + $0x18] sm:$0xff]  ;;  %v1301_v33 = vld [vmem:[#allocation13 + $0x8] sm:$0xff] }
  0x4d   :  { %453 = vmatpush.bf16.msra.mxu2 %v1280_v20  ;;  %v1075_v20 = vor.u32 %v1284_v17, %v1072_v19  ;;  %v1302_v32 = vld [vmem:[#allocation13 + $0x10] sm:$0xff]  ;;  %v1300_v34 = vld [vmem:[#allocation13] sm:$0xff]  ;;  %v1315_v35 = vld [vmem:[#allocation14 + $0x38] sm:$0xff] }
  0x4e   :  { %569 = vmatpush.bf16.msra.mxu3 %v1111_v47  ;;  %v1314_v36 = vld [vmem:[#allocation14 + $0x30] sm:$0xff]  ;;  %v1312_v40 = vld [vmem:[#allocation14 + $0x20] sm:$0xff]  ;;  %v1311_v43 = vld [vmem:[#allocation14 + $0x18] sm:$0xff] }
  0x4f   :  { %289 = vmatpush.bf16.msra.mxu0 %v1262_v10  ;;  %v1287_v10 = vld [vmem:[#allocation11 + $0x14] sm:$0xf0]  ;;  %v481_v37 = vld [vmem:[%s1867_s9] sm:$0x3]  ;;  %v1309_v57 = vld [vmem:[#allocation14 + $0x8] sm:$0xff] }
  0x50   :  { %372 = vmatpush.bf16.msra.mxu1 %v1270_v11  ;;  %v1286_v11 = vld [vmem:[#allocation11 + $0x14] sm:$0xf]  ;;  %v484_v39 = vperm.slane %v481_v37, 1  ;;  %v483_v45 = vperm.slane %v481_v37, 0  ;;  %v596_v51 = vld [vmem:[#allocation5] sm:$0xff]  ;;  %v1308_v58 = vld [vmem:[#allocation14] sm:$0xff] }
  0x51   :  { %454 = vmatpush.bf16.msra.mxu2 %v1279_v21  ;;  %v1307_v21 = vld [vmem:[#allocation13 + $0x38] sm:$0xff]  ;;  %v1321_v61 = vld [vmem:[#allocation16 + $0x28] sm:$0xff]  ;;  %v1320_v62 = vld [vmem:[#allocation16 + $0x20] sm:$0xff] }
  0x52   :  { %570 = vmatpush.bf16.msra.mxu3 %v1103_v53  ;;  %v1319_v63 = vld [vmem:[#allocation16 + $0x18] sm:$0xff]  ;;  %v1318_v0 = vld [vmem:[#allocation16 + $0x10] sm:$0xff] }
  0x53   :  { %290 = vmatpush.bf16.msra.mxu0 %v1261_v12  ;;  %v1079_v12 = vor.u32 %v1287_v10, %v1078_v9  ;;  %v1331_v9 = vld [vmem:[#allocation17 + $0x38] sm:$0xff]  ;;  %v1330_v10 = vld [vmem:[#allocation17 + $0x30] sm:$0xff] }
  0x54   :  { %373 = vmatpush.bf16.msra.mxu1 %v1269_v15  ;;  %v1070_v15 = vld [vmem:[#allocation11] sm:$0xf] }
  0x55   :  { %455 = vmatpush.bf16.msra.mxu2 %v1278_v22  ;;  %v1306_v22 = vld [vmem:[#allocation13 + $0x30] sm:$0xff] }
  0x56   :  { %571 = vmatpush.bf16.msra.mxu3 %v1095_v59  ;;  %v1323_v59 = vld [vmem:[#allocation16 + $0x38] sm:$0xff] }
  0x57   :  { %291 = vmatpush.bf16.msra.mxu0 %v1260_v13  ;;  %v1080_v13 = vld [vmem:[#allocation11 + $0x18] sm:$0xf0] }
  0x58   :  { %374 = vmatpush.bf16.msra.mxu1 %v1268_v16  ;;  %v1285_v16 = vld [vmem:[#allocation11 + $0x4] sm:$0xf0] }
  0x59   :  { %456 = vmatpush.bf16.msra.mxu2 %v1277_v29  ;;  %v1071_v18 = vor.u32 %v1285_v16, %v1070_v15  ;;  %v1352_v15 = vld [vmem:[%s1871_s13] ss:$0 sm:$0xff]  ;;  %s1675_s13 = smov [#allocation20]  }
  0x5a   :  { %292 = vmatmul.bf16.vlgmr.msra.gmra.mxu0 %v215_v14  ;;  %572 = vmatpush.bf16.msra.mxu3 %v1087_v1  ;;  %v1083_v14 = vor.u32 %v1286_v11, %v1080_v13  ;;  %v1351_v1 = vld [vmem:[%s1869_s11] ss:$0 sm:$0xff]  ;;  %v1329_v11 = vld [vmem:[#allocation17 + $0x28] sm:$0xff]  ;;  %v1327_v13 = vld [vmem:[#allocation17 + $0x18] sm:$0xff]  ;;  %s950_s18 = sshll.u32 %s1675_s13, 4  ;;  %s951_s18 = int_to_ptr.vmem [resolvable:$true] %s950_s18 }
  0x5b   :  { %580 = vmatpush.bf16.msrb.mxu0 %v1131_v38  ;;  %v1313_v38 = vld [vmem:[#allocation14 + $0x28] sm:$0xff] }
  0x5c   :  { %668 = vmatpush.bf16.msrb.mxu1 %v1307_v21  ;;  %v1325_v21 = vld [vmem:[#allocation17 + $0x8] sm:$0xff] }
  0x5d   :  { %457 = vmatpush.bf16.msra.mxu2 %v1276_v30  ;;  %v1304_v30 = vld [vmem:[#allocation13 + $0x20] sm:$0xff] }
  0x5e   :  { %573 = vmatpush.bf16.msra.mxu3 %v1079_v12  ;;  %v1328_v12 = vld [vmem:[#allocation17 + $0x20] sm:$0xff] }
  0x5f   :  { %581 = vmatpush.bf16.msrb.mxu0 %v1123_v42 }
  0x60   :  { %669 = vmatpush.bf16.msrb.mxu1 %v1306_v22  ;;  %v1324_v22 = vld [vmem:[#allocation17] sm:$0xff] }
  0x61   :  { %751 = vmatpush.bf16.msrb.mxu2 %v1315_v35 }
  0x62   :  { %574 = vmatpush.bf16.msra.mxu3 %v1071_v18 }
  0x63   :  { %582 = vmatpush.bf16.msrb.mxu0 %v1115_v48  ;;  %v1310_v48 = vld [vmem:[#allocation14 + $0x10] sm:$0xff] }
  0x65   :  { %752 = vmatpush.bf16.msrb.mxu2 %v1314_v36 }
  0x66   :  { %834 = vmatpush.bf16.msrb.mxu3 %v1323_v59 }
  0x67   :  { %583 = vmatpush.bf16.msrb.mxu0 %v1107_v54 }
  0x69   :  { %753 = vmatpush.bf16.msrb.mxu2 %v1313_v38 }
  0x6b   :  { %584 = vmatpush.bf16.msrb.mxu0 %v1099_v60  ;;  %v1322_v60 = vld [vmem:[#allocation16 + $0x30] sm:$0xff] }
  0x6c   :  { %835 = vmatpush.bf16.msrb.mxu3 %v1322_v60 }
  0x6d   :  { %754 = vmatpush.bf16.msrb.mxu2 %v1312_v40 }
  0x6f   :  { %585 = vmatpush.bf16.msrb.mxu0 %v1091_v2 }
  0x70   :  { %836 = vmatpush.bf16.msrb.mxu3 %v1321_v61 }
  0x71   :  { %755 = vmatpush.bf16.msrb.mxu2 %v1311_v43 }
  0x73   :  { %586 = vmatpush.bf16.msrb.mxu0 %v1083_v14  ;;  %v1326_v14 = vld [vmem:[#allocation17 + $0x10] sm:$0xff] }
  0x74   :  { %837 = vmatpush.bf16.msrb.mxu3 %v1320_v62 }
  0x75   :  { %756 = vmatpush.bf16.msrb.mxu2 %v1310_v48 }
  0x77   :  { %587 = vmatpush.bf16.msrb.mxu0 %v1075_v20 }
  0x78   :  { %838 = vmatpush.bf16.msrb.mxu3 %v1319_v63 }
  0x79   :  { %757 = vmatpush.bf16.msrb.mxu2 %v1309_v57 }
  0x7b   :  { %917 = vmatpush.bf16.msra.mxu0 %v1331_v9 }
  0x7c   :  { %839 = vmatpush.bf16.msrb.mxu3 %v1318_v0 }
  0x7d   :  { %758 = vmatpush.bf16.msrb.mxu2 %v1308_v58 }
  0x7f   :  { %918 = vmatpush.bf16.msra.mxu0 %v1330_v10 }
  0x83   :  { %919 = vmatpush.bf16.msra.mxu0 %v1329_v11 }
  0x87   :  { %920 = vmatpush.bf16.msra.mxu0 %v1328_v12 }
  0x8b   :  { %921 = vmatpush.bf16.msra.mxu0 %v1327_v13 }
  0x8f   :  { %922 = vmatpush.bf16.msra.mxu0 %v1326_v14 }
  0x93   :  { %923 = vmatpush.bf16.msra.mxu0 %v1325_v21 }
  0x97   :  { %924 = vmatpush.bf16.msra.mxu0 %v1324_v22 }
  0xd7   :  { %v293_v24 = vpop.f32.mrf.mxu0 }
  0xd8   :  { %v294_v25 = vadd.f32 %v1348_v23, %v293_v24  ;;  %v1305_v23 = vld [vmem:[#allocation13 + $0x28] sm:$0xff]  ;;  %v1350_v24 = vld [vmem:[%s1865_s7] ss:$0 sm:$0xff] }
  0xd9   :  { %670 = vmatpush.bf16.msrb.mxu1 %v1305_v23  ;;  %v1353_v23 = vld [vmem:[%s1873_s15] ss:$0 sm:$0xff]  ;;  %s1676_s15 = smov [#allocation19]  }
  0xda   :  { %v297_v26 = vmax.f32 %v294_v25, 0.0  ;;  %s939_s12 = sshll.u32 %s1676_s15, 4  ;;  %s940_s12 = int_to_ptr.vmem [resolvable:$true] %s939_s12 }
  0xdc   :  { %v298_v27 = vpack.c.bf16 %v297_v26, %v297_v26 }
  0xdd   :  { %671 = vmatpush.bf16.msrb.mxu1 %v1304_v30 }
  0xde   :  { %375 = vmatmul.bf16.vlgmr.msra.gmra.mxu1 %v298_v27 }
  0xdf   :  { %v295_v28 = vpop.f32.mrf.mxu0 }
  0xe1   :  { %672 = vmatpush.bf16.msrb.mxu1 %v1303_v31 }
  0xe5   :  { %673 = vmatpush.bf16.msrb.mxu1 %v1302_v32 }
  0xe9   :  { %674 = vmatpush.bf16.msrb.mxu1 %v1301_v33 }
  0xed   :  { %675 = vmatpush.bf16.msrb.mxu1 %v1300_v34 }
 0x15b   :  { %v376_v4 = vpop.f32.mrf.mxu1 }
 0x15c   :  { %v377_v5 = vadd.f32 %v1349_v3, %v376_v4 }
 0x15e   :  { %v380_v6 = vmax.f32 %v377_v5, 0.0 }
 0x160   :  { %v381_v7 = vpack.c.bf16 %v380_v6, %v380_v6 }
 0x162   :  { %458 = vmatmul.bf16.vlgmr.msra.gmra.mxu2 %v381_v7  ;;  %v1317_v7 = vld [vmem:[#allocation16 + $0x8] sm:$0xff] }
 0x163   :  { %v378_v8 = vpop.f32.mrf.mxu1  ;;  %840 = vmatpush.bf16.msrb.mxu3 %v1317_v7 }
 0x164   :  { %v1316_v8 = vld [vmem:[#allocation16] sm:$0xff] }
 0x167   :  { %841 = vmatpush.bf16.msrb.mxu3 %v1316_v8 }
 0x1e5   :  { %v459_v25 = vpop.f32.mrf.mxu2 }
 0x1e6   :  { %v460_v26 = vadd.f32 %v1350_v24, %v459_v25 }
 0x1e8   :  { %v463_v27 = vmax.f32 %v460_v26, 0.0 }
 0x1ea   :  { %v464_v28 = vpack.c.bf16 %v463_v27, %v463_v27 }
 0x1ec   :  { %575 = vmatmul.bf16.vlgmr.msra.gmra.mxu3 %v464_v28  ;;  %588 = vmatmul.bf16.vlgmr.msrb.gmra.mxu0 %v464_v28 }
 0x1ed   :  { %v461_v29 = vpop.f32.mrf.mxu2 }
 0x1ee   :  { %v1354_v29 = vld [vmem:[%s1875_s17] ss:$0 sm:$0xff] }
 0x269   :  { %v589_v41 = vpop.f32.mrf.mxu0 }
 0x26a   :  { %v590_v42 = vadd.f32 %v589_v41, %v484_v39 }
 0x26c   :  { %v593_v44 = vmul.f32 0.5, %v590_v42  ;;  %933 = vst [vmem:[#allocation20 + $0x8] sm:$0xff] %v590_v42 }
 0x26e   :  { %v594_v46 = vmul.f32 1.442695, %v593_v44 }
 0x26f   :  { %v576_v47 = vpop.f32.mrf.mxu3 }
 0x270   :  { %1355 = vpow2.f32 %v594_v46  ;;  %v577_v49 = vadd.f32 %v576_v47, %v483_v45 }
 0x271   :  { %v591_v50 = vpop.f32.mrf.mxu0 }
 0x272   :  { %932 = vst [vmem:[#allocation20] sm:$0xff] %v577_v49 }
 0x273   :  { %955 = dma.vmem_to_hbm [thread:$0]  %s951_s18, 256, %s953_s3, [#allocation21]  }
 0x276   :  { %v1356_v52 = vpop.eup %1355 }
 0x277   :  { %v597_v53 = vmul.f32 %v1356_v52, %v596_v51  ;;  %v578_v54 = vpop.f32.mrf.mxu3 }
 0x279   :  { %v598_v55 = vadd.f32 %v597_v53, %v577_v49 }
 0x27b   :  { %v599_v56 = vpack.c.bf16 %v598_v55, %v598_v55 }
 0x27d   :  { %676 = vmatmul.bf16.vlgmr.msrb.gmra.mxu1 %v599_v56 }
 0x2fa   :  { %v677_v2 = vpop.f32.mrf.mxu1 }
 0x2fb   :  { %v678_v3 = vadd.f32 %v1351_v1, %v677_v2 }
 0x2fd   :  { %v681_v4 = vmax.f32 %v678_v3, 0.0 }
 0x2ff   :  { %v682_v5 = vpack.c.bf16 %v681_v4, %v681_v4 }
 0x301   :  { %759 = vmatmul.bf16.vlgmr.msrb.gmra.mxu2 %v682_v5 }
 0x302   :  { %v679_v6 = vpop.f32.mrf.mxu1 }
 0x384   :  { %v760_v16 = vpop.f32.mrf.mxu2 }
 0x385   :  { %v761_v17 = vadd.f32 %v1352_v15, %v760_v16 }
 0x387   :  { %v764_v18 = vmax.f32 %v761_v17, 0.0 }
 0x389   :  { %v765_v19 = vpack.c.bf16 %v764_v18, %v764_v18 }
 0x38b   :  { %842 = vmatmul.bf16.vlgmr.msrb.gmra.mxu3 %v765_v19 }
 0x38c   :  { %v762_v20 = vpop.f32.mrf.mxu2 }
 0x40e   :  { %v843_v24 = vpop.f32.mrf.mxu3 }
 0x40f   :  { %v844_v25 = vadd.f32 %v1353_v23, %v843_v24 }
 0x411   :  { %v847_v26 = vmax.f32 %v844_v25, 0.0 }
 0x413   :  { %v848_v27 = vpack.c.bf16 %v847_v26, %v847_v26 }
 0x415   :  { %925 = vmatmul.bf16.vlgmr.msra.gmra.mxu0 %v848_v27 }
 0x416   :  { %v845_v28 = vpop.f32.mrf.mxu3 }
 0x492   :  { %v926_v30 = vpop.f32.mrf.mxu0 }
 0x493   :  { %v927_v31 = vadd.f32 %v1354_v29, %v926_v30 }
 0x495   :  { %v930_v32 = vpack.c.bf16 %v927_v31, %v927_v31 }
 0x497   :  { %931 = vst [vmem:[#allocation19] sm:$0xf] %v930_v32 }
 0x498   :  { %944 = dma.vmem_to_hbm [thread:$0]  %s940_s12, 64, %s942_s20, [#allocation4]  }
 0x49a   :  { %v928_v33 = vpop.f32.mrf.mxu0 }
 0x49b   :  { %1657 = dma.done.wait [#allocation4], 64  }
 0x49c   :  { %1658 = vsyncadd [#allocation4], 4294967232 }
 0x49d   :  { %1659 = dma.done.wait [#allocation21], 256  }
 0x49e   :  { %1660 = vsyncadd [#allocation21], 4294967040 }
 0x49f   :  { %964 = vsyncpa [#allocation3], 1 }
 0x4a0   :  { %965 = vsyncpa [#allocation6], 1 }
 0x4a1   :  { %966 = vsyncpa [#allocation9], 1 }
 0x4a2   :  { %967 = vsyncpa [#allocation12], 1 }
 0x4a3   :  { %968 = vsyncpa [#allocation15], 1 }
 0x4a4   :  { %969 = vsyncpa [#allocation18], 1 }
 0x4a5   :  { %970 = vsyncpa [#allocation4], 1 }
 0x4a6   :  { %971 = vsyncpa [#allocation21], 1 }

</bundles_post_ra>
